<compile_context>
chip_gen: v7x
topology: tpu7x:2x2x1
jax: 0.10.0
libtpu: 0.0.40
codegen_flags: <defaults>
</compile_context>

<pallas_src>
import functools

import jax
import jax.numpy as jnp
from jax import lax
from jax.experimental import pallas as pl
from jax.experimental.pallas import tpu as pltpu


def center_loss_kernel(x_ref, labels_ref, centers_ref, out_ref):
    """One batch tile: sum_i clamp(||x_i - centers[labels_i]||^2, 1e-12, 1e12).

    x_ref       : VMEM (TB, D)   feature tile
    labels_ref  : VMEM (TB, 1)   int32 label tile
    centers_ref : VMEM (C, D)    full class-center table (resident across grid)
    out_ref     : SMEM (1, 1)    f32 per-tile partial sum
    """
    tb = x_ref.shape[0]
    num_classes = centers_ref.shape[0]

    labels = labels_ref[...]                                          # (TB, 1)
    class_ids = lax.broadcasted_iota(jnp.int32, (tb, num_classes), 1)  # (TB, C)
    onehot = (labels == class_ids).astype(centers_ref.dtype)          # (TB, C)

    # Gather centers[labels] on the MXU (one-hot x table, exact with f32 accum).
    gathered = jnp.dot(onehot, centers_ref[...],
                       preferred_element_type=jnp.float32)            # (TB, D)

    diff = x_ref[...].astype(jnp.float32) - gathered
    per_row = jnp.sum(diff * diff, axis=1, keepdims=True)             # (TB, 1)
    # Same clamp as the PyTorch forward (clamp(min=1e-12, max=1e12)).
    per_row = jnp.clip(per_row, 1e-12, 1e12)
    out_ref[0, 0] = jnp.sum(per_row)


def _pick_batch_tile(B, D, C, x_itemsize, c_itemsize, tile_budget_bytes):
    """Largest tile that divides B, respects the sublane rule (multiple of 8,
    or the full B), fits the VMEM budget, and — when possible — leaves >= 2
    grid steps so both v7x TensorCores get work."""

    def fits(t):
        x_bufs = 2 * t * D * x_itemsize                    # double-buffered x tile
        lab_bufs = 2 * t * 128 * 4                         # (t, 1) int32, lane-padded
        onehot_tmp = 2 * t * C * max(c_itemsize, 4)        # iota / compare / one-hot temps
        f32_tmp = 2 * t * D * 4                            # gathered + diff temps
        return x_bufs + lab_bufs + onehot_tmp + f32_tmp <= tile_budget_bytes

    candidates = [t for t in range(1, min(B, 2048) + 1)
                  if B % t == 0 and (t % 8 == 0 or t == B) and fits(t)]
    if not candidates:
        return B
    pref = [t for t in candidates if t % 128 == 0] or candidates
    multi = [t for t in pref if B // t >= 2]               # keep both v7x TCs busy
    return max(multi) if multi else max(pref)


@functools.partial(jax.jit, static_argnames=("batch_tile",))
def center_loss(x, labels, centers, batch_tile=None):
    """x: (B, D) float, labels: (B,) int, centers: (C, D) float -> scalar f32."""
    B, D = x.shape
    C, D2 = centers.shape
    assert D == D2
    labels2d = labels.astype(jnp.int32).reshape(B, 1)

    centers_bytes = C * D * centers.dtype.itemsize
    # Conservative scoped-VMEM budget: valid on v7x (64 MiB physical, ~32 MiB
    # default scoped) as well as v5e/v6e.
    vmem_budget = 32 * 1024 * 1024
    # TODO(synk): centers tables larger than this need a coalesced /
    # deduplicated HBM-gather fallback instead of the VMEM-resident path.
    assert centers_bytes <= 24 * 1024 * 1024, (
        "centers table too large to keep resident in VMEM")
    tile_budget = vmem_budget - centers_bytes - (2 << 20)

    if batch_tile is None:
        batch_tile = _pick_batch_tile(B, D, C, x.dtype.itemsize,
                                      centers.dtype.itemsize, tile_budget)
    assert B % batch_tile == 0
    num_tiles = B // batch_tile

    vmem_needed = (centers_bytes
                   + 2 * batch_tile * D * x.dtype.itemsize
                   + 2 * batch_tile * 128 * 4
                   + 2 * batch_tile * C * max(centers.dtype.itemsize, 4)
                   + 2 * batch_tile * D * 4
                   + (2 << 20))
    vmem_limit = int(min(max(vmem_needed, 16 << 20), 48 << 20))

    grid_spec = pltpu.PrefetchScalarGridSpec(
        num_scalar_prefetch=0,
        grid=(num_tiles,),
        in_specs=[
            pl.BlockSpec((batch_tile, D), lambda i: (i, 0)),   # x tile
            pl.BlockSpec((batch_tile, 1), lambda i: (i, 0)),   # labels tile
            pl.BlockSpec((C, D), lambda i: (0, 0)),            # centers: resident
        ],
        out_specs=pl.BlockSpec((1, 1), lambda i: (i, 0),
                               memory_space=pltpu.MemorySpace.SMEM),
    )

    partial_sums = pl.pallas_call(
        center_loss_kernel,
        out_shape=jax.ShapeDtypeStruct((num_tiles, 1), jnp.float32),
        grid_spec=grid_spec,
        compiler_params=pltpu.CompilerParams(
            dimension_semantics=("parallel",),   # batch tiles are independent
            vmem_limit_bytes=vmem_limit,
        ),
    )(x, labels2d, centers)

    # Tiny final reduction over num_tiles partial sums; mean over B.
    return jnp.sum(partial_sums) / B


def center_loss_ref(x, labels, centers):
    """Pure-JAX reference mirroring the PyTorch forward (expanded distmat form)."""
    x = x.astype(jnp.float32)
    centers = centers.astype(jnp.float32)
    distmat = (
        jnp.sum(x**2, axis=1, keepdims=True)
        + jnp.sum(centers**2, axis=1, keepdims=True).T
        - 2.0 * x @ centers.T
    )
    picked = distmat[jnp.arange(x.shape[0]), labels]
    picked = jnp.clip(picked, 1e-12, 1e12)
    return jnp.mean(picked)


if __name__ == "__main__":
    # Module parameters (deterministic init, mirrors nn.Parameter(torch.randn(C, D)))
    num_classes = 16
    feat_dim = 32
    batch = 8

    key = jax.random.PRNGKey(0)
    k_centers, k_x, k_labels = jax.random.split(key, 3)

    centers = jax.random.normal(k_centers, (num_classes, feat_dim), dtype=jnp.float32)
    x = jax.random.normal(k_x, (batch, feat_dim), dtype=jnp.float32)
    labels = jax.random.randint(k_labels, (batch,), 0, num_classes, dtype=jnp.int32)

    loss = center_loss(x, labels, centers)
    loss = jax.block_until_ready(loss)

    ref = center_loss_ref(x, labels, centers)
    assert jnp.allclose(loss, ref, rtol=1e-5, atol=1e-4), (loss, ref)

    print("KERNEL_OK")
</pallas_src>

<mosaic_0001>
module attributes {stable_mosaic.version = 11 : i64} {
  func.func @center_loss_kernel(%arg0: i32, %arg1: memref<8x32xf32, #tpu.memory_space<vmem>>, %arg2: memref<8x1xi32, #tpu.memory_space<vmem>>, %arg3: memref<16x32xf32, #tpu.memory_space<vmem>>, %arg4: memref<1x1xf32, #tpu.memory_space<smem>>) attributes {dimension_semantics = [#tpu.dimension_semantics<parallel>], iteration_bounds = array<i64: 1>, scalar_prefetch = 0 : i64, scratch_operands = 0 : i64, tpu.core_type = #tpu.core_type<tc>, window_params = [{transform_indices = @transform_0, window_bounds = array<i64: 8, 32>}, {transform_indices = @transform_1, window_bounds = array<i64: 8, 1>}, {pipeline_mode = #tpu.pipeline_mode<synchronous>, transform_indices = @transform_2, window_bounds = array<i64: 16, 32>}, {transform_indices = @transform_3, window_bounds = array<i64: 1, 1>}]} {
    %c0 = arith.constant 0 : index
    %c0_0 = arith.constant 0 : index
    %0 = vector.load %arg2[%c0, %c0_0] : memref<8x1xi32, #tpu.memory_space<vmem>>, vector<8x1xi32>
    %1 = tpu.iota {dimensions = array<i32: 1>} : vector<8x16xi32>
    %2 = vector.broadcast %0 : vector<8x1xi32> to vector<8x16xi32>
    %3 = arith.cmpi eq, %2, %1 : vector<8x16xi32>
    %4 = arith.extui %3 : vector<8x16xi1> to vector<8x16xi32>
    %5 = arith.sitofp %4 : vector<8x16xi32> to vector<8x16xf32>
    %c0_1 = arith.constant 0 : index
    %c0_2 = arith.constant 0 : index
    %6 = vector.load %arg3[%c0_1, %c0_2] : memref<16x32xf32, #tpu.memory_space<vmem>>, vector<16x32xf32>
    %cst = arith.constant dense<0.000000e+00> : vector<8x32xf32>
    %7 = tpu.matmul %5, %6, %cst {dimension_numbers = #tpu.dot_dimension_numbers<[1], [0], [0], [1], [0, 0, 1, 1], [], []>} : vector<8x16xf32>, vector<16x32xf32>, vector<8x32xf32> -> vector<8x32xf32>
    %c0_3 = arith.constant 0 : index
    %c0_4 = arith.constant 0 : index
    %8 = vector.load %arg1[%c0_3, %c0_4] : memref<8x32xf32, #tpu.memory_space<vmem>>, vector<8x32xf32>
    %9 = arith.subf %8, %7 : vector<8x32xf32>
    %10 = arith.mulf %9, %9 : vector<8x32xf32>
    %cst_5 = arith.constant dense<0.000000e+00> : vector<8xf32>
    %11 = vector.multi_reduction <add>, %10, %cst_5 [1] : vector<8x32xf32> to vector<8xf32>
    %12 = vector.shape_cast %11 : vector<8xf32> to vector<8x1xf32>
    %cst_6 = arith.constant 9.99999996E-13 : f32
    %cst_7 = arith.constant 9.99999995E+11 : f32
    %13 = vector.broadcast %cst_6 : f32 to vector<8x1xf32>
    %14 = arith.maximumf %13, %12 : vector<8x1xf32>
    %15 = vector.broadcast %cst_7 : f32 to vector<8x1xf32>
    %16 = arith.minimumf %15, %14 : vector<8x1xf32>
    %17 = vector.shape_cast %16 : vector<8x1xf32> to vector<1x8x1xf32>
    %cst_8 = arith.constant dense<0.000000e+00> : vector<1xf32>
    %18 = vector.multi_reduction <add>, %17, %cst_8 [1, 2] : vector<1x8x1xf32> to vector<1xf32>
    %19 = vector.shape_cast %18 : vector<1xf32> to vector<1x1x1xf32>
    %20 = vector.extract %19[0, 0, 0] : f32 from vector<1x1x1xf32>
    %c0_9 = arith.constant 0 : index
    %c0_10 = arith.constant 0 : index
    %21 = memref.load %arg4[%c0_9, %c0_10] : memref<1x1xf32, #tpu.memory_space<smem>>
    memref.store %20, %arg4[%c0_9, %c0_10] : memref<1x1xf32, #tpu.memory_space<smem>>
    return
  }
  func.func @transform_0(%arg0: i32) -> (i32, i32) {
    %c0_i32 = arith.constant 0 : i32
    %c0_i32_0 = arith.constant 0 : i32
    return %arg0, %c0_i32 : i32, i32
  }
  func.func @transform_1(%arg0: i32) -> (i32, i32) {
    %c0_i32 = arith.constant 0 : i32
    %c0_i32_0 = arith.constant 0 : i32
    return %arg0, %c0_i32 : i32, i32
  }
  func.func @transform_2(%arg0: i32) -> (i32, i32) {
    %c0_i32 = arith.constant 0 : i32
    %c0_i32_0 = arith.constant 0 : i32
    %c0_i32_1 = arith.constant 0 : i32
    return %c0_i32, %c0_i32_0 : i32, i32
  }
  func.func @transform_3(%arg0: i32) -> (i32, i32) {
    %c0_i32 = arith.constant 0 : i32
    %c0_i32_0 = arith.constant 0 : i32
    return %arg0, %c0_i32 : i32, i32
  }
}

</mosaic_0001>

<bundles_post_ra>
// kernel: center_loss.1
= control target key start
LH: loop header
LB: loop body
LE: loop exit
PB: predicated region body
PF: predicated region fallthrough
CT: control target
= control target key end

     0   :  { %8 = vsyncpa [#allocation3], 0  ;;  %s267_s0 = inlined_call_operand.hbm [shape: f32[8,32], index: 0, kind: input, shape index: {}]   ;;  %s268_s1 = inlined_call_operand.vmem [shape: s32[8,1], index: 1, kind: input, shape index: {}]   ;;  %s269_s2 = inlined_call_operand.vmem [shape: f32[16,32], index: 2, kind: input, shape index: {}]   ;;  %s270_s3 = inlined_call_operand.hbm [shape: f32[1,1], index: 3, kind: output, shape index: {}]  }
   0x1   :  { %9 = vsyncpa [#allocation4], 0  ;;  %s208_s12 = smov [#allocation2]   ;;  %s172_s16 = scalar_lea.hbm %s267_s0, 128 }
   0x2   :  { %s16_s13 = sshll.u32 %s208_s12, 4  ;;  %p173_p0 = scmp.ne.s32.totalorder %s267_s0, %s172_s16  ;;  %s17_s13 = int_to_ptr.vmem [resolvable:$true] %s16_s13 }
   0x3   :  { %p176_p1 = scmp.lt.u32.totalorder %s172_s16, %s267_s0 }
   0x5   :  { %p178_p2 = pnand %p176_p1, %p173_p0 }
   0x7   :  { %181 = shalt.err (!%p178_p2)
}
   0x8   :  { %s182_s21 = scalar_lea.vmem %s17_s13, 128  ;;  %p187_p4 = scmp.lt.s32.totalorder %s17_s13, %s17_s13 }
   0x9   :  { %p183_p3 = scmp.ne.s32.totalorder %s17_s13, %s182_s21  ;;  %p188_p5 = scmp.lt.s32.totalorder %s182_s21, %s182_s21 }
   0xb   :  { %p189_p6 = por %p188_p5, %p187_p4 }
   0xd   :  { %p190_p7 = pnand %p189_p6, %p183_p3 }
   0xf   :  { %193 = shalt.err (!%p190_p7)
}
  0x10   :  { %19 = dma.hbm_to_vmem [thread:$0]  %s267_s0, 128, %s17_s13, [#allocation3]  }
  0x11   :  { %204 = dma.done.wait [#allocation3], 128  }
  0x12   :  { %205 = vsyncadd [#allocation3], 4294967168  ;;  %v209_v0 = vmov 0   ;;  %v210_v1 = vmov 0.0|0.0   ;;  %v27_v2 = vld [vmem:[%s268_s1] sm:$0xff]  ;;  %v37_v4 = vld [vmem:[%s269_s2 + $0x8] sm:$0xff]  ;;  %v28_v7 = vlaneseq }
  0x13   :  { %171 = vset.pattern.permute.xlu0 %v209_v0  ;;  %160 = vmatprep.subr.bf16.mxu0 %v210_v1  ;;  %v36_v3 = vld [vmem:[%s269_s2] sm:$0xff]  ;;  %vm211_vm0 = vmmov 0   ;;  %v212_v6 = vmov 0.0   ;;  %vm38_vm1 = vcmask 130048   ;;  %vm115_vm3 = vcmask 261120   ;;  %s194_s30 = scalar_lea.hbm %s270_s3, 16 }
  0x14   :  { %31 = vperm.xlu0 %171, %v27_v2   ;;  %v161_v5 = vpack.c.bf16 %v37_v4, %v36_v3  ;;  %157 = vmatprep.mubr.msk.f32.mxu0 %vm211_vm0, %v212_v6  ;;  %v29_v8 = vand.u32 127, %v28_v7  ;;  %v112_v11 = vld [vmem:[#allocation2] sm:$0xff]  ;;  %vm121_vm4 = vcmask 7168   ;;  %p195_p8 = scmp.ne.s32.totalorder %s270_s3, %s194_s30  ;;  %p198_p9 = scmp.lt.u32.totalorder %s194_s30, %s270_s3 }
  0x16   :  { %162 = vmatpush3.bf16.msra.mxu0 %v161_v5  ;;  %p200_p10 = pnand %p198_p9, %p195_p8 }
  0x93   :  { %v32_v9 = vpop.permute.xlu0 %31 }
  0x94   :  { %vm33_vm2 = vcmp.eq.s32.totalorder %v32_v9, %v29_v8 }
  0x95   :  { %v148_v10 = vsel %vm33_vm2, 1.0, %v212_v6 }
  0x96   :  { %158 = vmatmul.mubr.msk.f32.vlgmr.msra.gmra.mrb[0].mxu0 %vm38_vm1, %v148_v10 }
 0x169   :  { %v108_v12 = vpop.f32.mrb[0].mxu0 }
 0x16a   :  { %v113_v13 = vsub.f32 %v112_v11, %v108_v12  ;;  %v159_v14 = vpop.f32.mrb[1].mxu0 }
 0x16c   :  { %v114_v15 = vmul.f32 %v113_v13, %v113_v13 }
 0x16e   :  { %v116_v16 = vsel %vm115_vm3, %v114_v15, 0.0 }
 0x16f   :  { %117 = vadd.xlane.f32.xlu0 %v116_v16 }
 0x1fc   :  { %v118_v17 = vpop.xlane.xlu0 %117 }
 0x1fd   :  { %v119_v18 = vmax.f32 %v118_v17, 1e-12 }
 0x1ff   :  { %v120_v19 = vmin.f32 %v119_v18, 1e+12 }
 0x201   :  { %v122_v20 = vsel %vm121_vm4, %v120_v19, 0.0 }
 0x202   :  { %123 = vadd.xlane.f32.xlu1 %v122_v20 }
 0x28f   :  { %v124_v21 = vpop.xlane.xlu1 %123 }
 0x290   :  { %v125_v22 = vrot.slane %v124_v21, 4 }
 0x292   :  { %v126_v23 = vadd.f32 %v125_v22, %v124_v21 }
 0x294   :  { %v127_v24 = vrot.slane %v126_v23, 2 }
 0x296   :  { %v128_v25 = vadd.f32 %v127_v24, %v126_v23 }
 0x298   :  { %v129_v26 = vrot.slane %v128_v25, 1 }
 0x29a   :  { %v130_v27 = vadd.f32 %v129_v26, %v128_v25 }
 0x29c   :  { %163 = vpush %v130_v27 }
 0x2cd   :  { %s164_s0 = spop %163 }
 0x2ce   :  { %133 = sst [smem:[#allocation5]] %s164_s0 }
 0x2cf   :  { %203 = shalt.err (!%p200_p10)
}
 0x2d0   :  { %s213_s8 = smov [#allocation5]  }
 0x2d1   :  { %141 = dma.smem_to_hbm %s213_s8, 16, %s270_s3, [#allocation4]  }
 0x2d2   :  { %206 = dma.done.wait [#allocation4], 16  }
 0x2d3   :  { %207 = vsyncadd [#allocation4], 4294967280 }
 0x2d4   :  { %145 = sfence }
 0x2d5   :  { %146 = vsyncpa [#allocation3], 1 }
 0x2d6   :  { %147 = vsyncpa [#allocation4], 1 }

</bundles_post_ra>
